<compile_context>
chip_gen: v6e
topology: v6e:2x2x1
jax: 0.10.0
libtpu: 0.0.40
codegen_flags: <defaults>
</compile_context>

<pallas_src>
import math

import jax
import jax.numpy as jnp
from jax.experimental import pallas as pl
from jax.experimental.pallas import tpu as pltpu


def _flash_kernel(x1_ref, x2_ref, o_ref, m_sc, l_sc, acc_sc):
    # x1_ref: (BB, TM, D), x2_ref: (BB, TN, D), o_ref: (BB, TM, D)
    # scratch: m_sc/l_sc: (BB, TM, 1) f32, acc_sc: (BB, TM, D) f32
    ni = pl.program_id(2)

    @pl.when(ni == 0)
    def _():
        m_sc[...] = jnp.full_like(m_sc, -jnp.inf)
        l_sc[...] = jnp.zeros_like(l_sc)
        acc_sc[...] = jnp.zeros_like(acc_sc)

    q = x1_ref[...]   # (BB, TM, D)
    kv = x2_ref[...]  # (BB, TN, D)

    # v2 = v1 / (1/sqrt(D)) == v1 * sqrt(D); fold the scale into Q (done once per
    # Q tile, an M*D-element VPU op instead of an M*N-element one per KV tile).
    scale = math.sqrt(float(q.shape[-1]))
    qs = q * jnp.asarray(scale, dtype=q.dtype)

    # scores = Q @ K^T without an explicit transpose: contract the last dims.
    s = jnp.einsum("bmd,bnd->bmn", qs, kv,
                   preferred_element_type=jnp.float32)          # (BB, TM, TN) f32

    # Online softmax (running max / running sum) so tiling over N stays exact.
    m_prev = m_sc[...]                                          # (BB, TM, 1)
    m_new = jnp.maximum(m_prev, jnp.max(s, axis=-1, keepdims=True))
    alpha = jnp.exp(m_prev - m_new)
    p = jnp.exp(s - m_new)                                      # (BB, TM, TN)

    l_sc[...] = alpha * l_sc[...] + jnp.sum(p, axis=-1, keepdims=True)
    pv = jnp.einsum("bmn,bnd->bmd", p.astype(kv.dtype), kv,
                    preferred_element_type=jnp.float32)         # (BB, TM, D) f32
    acc_sc[...] = alpha * acc_sc[...] + pv
    m_sc[...] = m_new

    @pl.when(ni == pl.num_programs(2) - 1)
    def _():
        # approx reciprocal -> EUP slot (co-issues with VPU/MXU work).
        inv_l = pl.reciprocal(l_sc[...], approx=True)
        o_ref[...] = (acc_sc[...] * inv_l).astype(o_ref.dtype)


def _choose_tile(total: int, preferred: int) -> int:
    """Largest candidate tile <= preferred that exactly divides `total`."""
    if total <= preferred:
        return total
    for cand in (preferred, 1024, 512, 256, 128, 64, 32, 16, 8):
        if cand <= preferred and total % cand == 0:
            return cand
    return total  # fallback: whole axis in one block


def _largest_divisor_leq(n: int, cap: int) -> int:
    best = 1
    d = 1
    while d * d <= n:
        if n % d == 0:
            if d <= cap:
                best = max(best, d)
            q = n // d
            if q <= cap:
                best = max(best, q)
        d += 1
    return best


def sdp_model(x1: jax.Array, x2: jax.Array, *, tm_pref: int = 256,
              tn_pref: int = 512) -> jax.Array:
    B, M, D = x1.shape
    B2, N, D2 = x2.shape
    assert B == B2 and D == D2, "x1 / x2 batch and feature dims must match"

    tm = _choose_tile(M, tm_pref)
    tn = _choose_tile(N, tn_pref)

    # If a whole (M, N) slice fits in a single tile (tiny problem, e.g. the demo
    # shapes), fold several batch slices per grid step to amortize per-step cost
    # and keep the output store denser.  Budget ~512 KiB of f32 scores per step.
    bb = 1
    if tm == M and tn == N:
        cap = max(1, (512 * 1024) // max(1, M * N * 4))
        bb = _largest_divisor_leq(B, min(B, cap))

    grid = (B // bb, M // tm, N // tn)

    itemsize = jnp.dtype(x1.dtype).itemsize
    cost = pl.CostEstimate(
        flops=4 * B * M * N * D,                 # QK^T + PV matmuls
        transcendentals=B * M * N,               # exp
        bytes_accessed=(B * M * D + B * N * D + B * M * D) * itemsize,
    )

    return pl.pallas_call(
        _flash_kernel,
        out_shape=jax.ShapeDtypeStruct((B, M, D), x1.dtype),
        grid_spec=pltpu.PrefetchScalarGridSpec(
            num_scalar_prefetch=0,
            grid=grid,
            in_specs=[
                pl.BlockSpec((bb, tm, D), lambda b, mi, ni: (b, mi, 0)),
                pl.BlockSpec((bb, tn, D), lambda b, mi, ni: (b, ni, 0)),
            ],
            out_specs=pl.BlockSpec((bb, tm, D), lambda b, mi, ni: (b, mi, 0)),
            scratch_shapes=[
                pltpu.VMEM((bb, tm, 1), jnp.float32),   # running max
                pltpu.VMEM((bb, tm, 1), jnp.float32),   # running sum
                pltpu.VMEM((bb, tm, D), jnp.float32),   # output accumulator
            ],
        ),
        compiler_params=pltpu.CompilerParams(
            dimension_semantics=("parallel", "parallel", "arbitrary")),
        cost_estimate=cost,
    )(x1, x2)


def _reference(x1, x2):
    v1 = jnp.einsum("bmd,bnd->bmn", x1, x2)
    inv_scale = 1.0 / math.sqrt(x2.shape[-1])
    v2 = v1 / inv_scale
    v3 = jax.nn.softmax(v2, axis=-1)
    return jnp.einsum("bmn,bnd->bmd", v3, x2)


if __name__ == "__main__":
    key = jax.random.PRNGKey(0)
    k1, k2 = jax.random.split(key)
    # Small shapes consistent with the module's forward: x1 (B, M, D), x2 (B, N, D)
    B, M, N, D = 2, 32, 16, 8
    x1 = jax.random.normal(k1, (B, M, D), dtype=jnp.float32)
    x2 = jax.random.normal(k2, (B, N, D), dtype=jnp.float32)

    out = jax.block_until_ready(sdp_model(x1, x2))

    ref = _reference(x1, x2)
    assert out.shape == (B, M, D)
    # Slightly relaxed tolerance: the softmax denominator uses the EUP's
    # approximate reciprocal (pl.reciprocal(approx=True)).
    assert jnp.allclose(out, ref, atol=5e-3, rtol=5e-3), "mismatch vs reference"

    print("KERNEL_OK")
</pallas_src>

<mosaic_0001>
module attributes {stable_mosaic.version = 11 : i64} {
  func.func @_flash_kernel(%arg0: i32, %arg1: i32, %arg2: i32, %arg3: memref<2x32x8xf32, #tpu.memory_space<vmem>>, %arg4: memref<2x16x8xf32, #tpu.memory_space<vmem>>, %arg5: memref<2x32x8xf32, #tpu.memory_space<vmem>>, %arg6: memref<2x32x1xf32, #tpu.memory_space<vmem>>, %arg7: memref<2x32x1xf32, #tpu.memory_space<vmem>>, %arg8: memref<2x32x8xf32, #tpu.memory_space<vmem>>) attributes {dimension_semantics = [#tpu.dimension_semantics<parallel>, #tpu.dimension_semantics<parallel>, #tpu.dimension_semantics<arbitrary>], iteration_bounds = array<i64: 1, 1, 1>, scalar_prefetch = 0 : i64, scratch_operands = 3 : i64, tpu.core_type = #tpu.core_type<tc>, window_params = [{transform_indices = @transform_0, window_bounds = array<i64: 2, 32, 8>}, {transform_indices = @transform_1, window_bounds = array<i64: 2, 16, 8>}, {transform_indices = @transform_2, window_bounds = array<i64: 2, 32, 8>}]} {
    %c0_i32 = arith.constant 0 : i32
    %0 = arith.cmpi eq, %arg2, %c0_i32 : i32
    %1 = arith.extui %0 : i1 to i32
    %c0_i32_0 = arith.constant 0 : i32
    %2 = arith.cmpi ne, %1, %c0_i32_0 : i32
    scf.if %2 {
      %cst_30 = arith.constant 0xFF800000 : f32
      %33 = vector.broadcast %cst_30 : f32 to vector<2x32x1xf32>
      %c0_31 = arith.constant 0 : index
      %c0_32 = arith.constant 0 : index
      %c0_33 = arith.constant 0 : index
      %34 = vector.load %arg6[%c0_31, %c0_32, %c0_33] : memref<2x32x1xf32, #tpu.memory_space<vmem>>, vector<2x32x1xf32>
      tpu.vector_store %arg6[%c0_31, %c0_32, %c0_33], %33 {strides = array<i32>} : memref<2x32x1xf32, #tpu.memory_space<vmem>>, vector<2x32x1xf32>,
      %cst_34 = arith.constant 0.000000e+00 : f32
      %35 = vector.broadcast %cst_34 : f32 to vector<2x32x1xf32>
      %c0_35 = arith.constant 0 : index
      %c0_36 = arith.constant 0 : index
      %c0_37 = arith.constant 0 : index
      %36 = vector.load %arg7[%c0_35, %c0_36, %c0_37] : memref<2x32x1xf32, #tpu.memory_space<vmem>>, vector<2x32x1xf32>
      tpu.vector_store %arg7[%c0_35, %c0_36, %c0_37], %35 {strides = array<i32>} : memref<2x32x1xf32, #tpu.memory_space<vmem>>, vector<2x32x1xf32>,
      %cst_38 = arith.constant 0.000000e+00 : f32
      %37 = vector.broadcast %cst_38 : f32 to vector<2x32x8xf32>
      %c0_39 = arith.constant 0 : index
      %c0_40 = arith.constant 0 : index
      %c0_41 = arith.constant 0 : index
      %38 = vector.load %arg8[%c0_39, %c0_40, %c0_41] : memref<2x32x8xf32, #tpu.memory_space<vmem>>, vector<2x32x8xf32>
      tpu.vector_store %arg8[%c0_39, %c0_40, %c0_41], %37 {strides = array<i32>} : memref<2x32x8xf32, #tpu.memory_space<vmem>>, vector<2x32x8xf32>,
    } else {
    }
    %c0 = arith.constant 0 : index
    %c0_1 = arith.constant 0 : index
    %c0_2 = arith.constant 0 : index
    %3 = vector.load %arg3[%c0, %c0_1, %c0_2] : memref<2x32x8xf32, #tpu.memory_space<vmem>>, vector<2x32x8xf32>
    %c0_3 = arith.constant 0 : index
    %c0_4 = arith.constant 0 : index
    %c0_5 = arith.constant 0 : index
    %4 = vector.load %arg4[%c0_3, %c0_4, %c0_5] : memref<2x16x8xf32, #tpu.memory_space<vmem>>, vector<2x16x8xf32>
    %cst = arith.constant 2.82842708 : f32
    %5 = vector.broadcast %cst : f32 to vector<2x32x8xf32>
    %6 = arith.mulf %3, %5 : vector<2x32x8xf32>
    "tpu.trace_start"() <{level = 10 : i32, message = "bmd,bnd->bmn"}> : () -> ()
    %cst_6 = arith.constant dense<0.000000e+00> : vector<2x32x16xf32>
    %7 = tpu.matmul %6, %4, %cst_6 {dimension_numbers = #tpu.dot_dimension_numbers<[2], [2], [1], [1], [0, 0, 0, 1, 1, 1], [0], [0]>} : vector<2x32x8xf32>, vector<2x16x8xf32>, vector<2x32x16xf32> -> vector<2x32x16xf32>
    "tpu.trace_stop"() : () -> ()
    %c0_7 = arith.constant 0 : index
    %c0_8 = arith.constant 0 : index
    %c0_9 = arith.constant 0 : index
    %8 = vector.load %arg6[%c0_7, %c0_8, %c0_9] : memref<2x32x1xf32, #tpu.memory_space<vmem>>, vector<2x32x1xf32>
    %cst_10 = arith.constant dense<0xFF800000> : vector<2x32xf32>
    %9 = vector.multi_reduction <maximumf>, %7, %cst_10 [2] : vector<2x32x16xf32> to vector<2x32xf32>
    %10 = vector.shape_cast %9 : vector<2x32xf32> to vector<2x32x1xf32>
    %11 = arith.maximumf %8, %10 : vector<2x32x1xf32>
    %12 = arith.subf %8, %11 : vector<2x32x1xf32>
    %13 = math.exp %12 : vector<2x32x1xf32>
    %14 = vector.broadcast %11 : vector<2x32x1xf32> to vector<2x32x16xf32>
    %15 = arith.subf %7, %14 : vector<2x32x16xf32>
    %16 = math.exp %15 : vector<2x32x16xf32>
    %c0_11 = arith.constant 0 : index
    %c0_12 = arith.constant 0 : index
    %c0_13 = arith.constant 0 : index
    %17 = vector.load %arg7[%c0_11, %c0_12, %c0_13] : memref<2x32x1xf32, #tpu.memory_space<vmem>>, vector<2x32x1xf32>
    %18 = arith.mulf %13, %17 : vector<2x32x1xf32>
    %cst_14 = arith.constant dense<0.000000e+00> : vector<2x32xf32>
    %19 = vector.multi_reduction <add>, %16, %cst_14 [2] : vector<2x32x16xf32> to vector<2x32xf32>
    %20 = vector.shape_cast %19 : vector<2x32xf32> to vector<2x32x1xf32>
    %21 = arith.addf %18, %20 : vector<2x32x1xf32>
    %c0_15 = arith.constant 0 : index
    %c0_16 = arith.constant 0 : index
    %c0_17 = arith.constant 0 : index
    %22 = vector.load %arg7[%c0_15, %c0_16, %c0_17] : memref<2x32x1xf32, #tpu.memory_space<vmem>>, vector<2x32x1xf32>
    tpu.vector_store %arg7[%c0_15, %c0_16, %c0_17], %21 {strides = array<i32>} : memref<2x32x1xf32, #tpu.memory_space<vmem>>, vector<2x32x1xf32>,
    "tpu.trace_start"() <{level = 10 : i32, message = "bmn,bnd->bmd"}> : () -> ()
    %cst_18 = arith.constant dense<0.000000e+00> : vector<2x32x8xf32>
    %23 = tpu.matmul %16, %4, %cst_18 {dimension_numbers = #tpu.dot_dimension_numbers<[2], [1], [1], [2], [0, 0, 0, 1, 1, 2], [0], [0]>} : vector<2x32x16xf32>, vector<2x16x8xf32>, vector<2x32x8xf32> -> vector<2x32x8xf32>
    "tpu.trace_stop"() : () -> ()
    %c0_19 = arith.constant 0 : index
    %c0_20 = arith.constant 0 : index
    %c0_21 = arith.constant 0 : index
    %24 = vector.load %arg8[%c0_19, %c0_20, %c0_21] : memref<2x32x8xf32, #tpu.memory_space<vmem>>, vector<2x32x8xf32>
    %25 = vector.broadcast %13 : vector<2x32x1xf32> to vector<2x32x8xf32>
    %26 = arith.mulf %25, %24 : vector<2x32x8xf32>
    %27 = arith.addf %26, %23 : vector<2x32x8xf32>
    %c0_22 = arith.constant 0 : index
    %c0_23 = arith.constant 0 : index
    %c0_24 = arith.constant 0 : index
    %28 = vector.load %arg8[%c0_22, %c0_23, %c0_24] : memref<2x32x8xf32, #tpu.memory_space<vmem>>, vector<2x32x8xf32>
    tpu.vector_store %arg8[%c0_22, %c0_23, %c0_24], %27 {strides = array<i32>} : memref<2x32x8xf32, #tpu.memory_space<vmem>>, vector<2x32x8xf32>,
    %c0_25 = arith.constant 0 : index
    %c0_26 = arith.constant 0 : index
    %c0_27 = arith.constant 0 : index
    %29 = vector.load %arg6[%c0_25, %c0_26, %c0_27] : memref<2x32x1xf32, #tpu.memory_space<vmem>>, vector<2x32x1xf32>
    tpu.vector_store %arg6[%c0_25, %c0_26, %c0_27], %11 {strides = array<i32>} : memref<2x32x1xf32, #tpu.memory_space<vmem>>, vector<2x32x1xf32>,
    %c0_i32_28 = arith.constant 0 : i32
    %30 = arith.cmpi eq, %arg2, %c0_i32_28 : i32
    %31 = arith.extui %30 : i1 to i32
    %c0_i32_29 = arith.constant 0 : i32
    %32 = arith.cmpi ne, %31, %c0_i32_29 : i32
    scf.if %32 {
      %c0_30 = arith.constant 0 : index
      %c0_31 = arith.constant 0 : index
      %c0_32 = arith.constant 0 : index
      %33 = vector.load %arg7[%c0_30, %c0_31, %c0_32] : memref<2x32x1xf32, #tpu.memory_space<vmem>>, vector<2x32x1xf32>
      %34 = tpu.reciprocal %33 {approx = true} : vector<2x32x1xf32> -> vector<2x32x1xf32>
      %c0_33 = arith.constant 0 : index
      %c0_34 = arith.constant 0 : index
      %c0_35 = arith.constant 0 : index
      %35 = vector.load %arg8[%c0_33, %c0_34, %c0_35] : memref<2x32x8xf32, #tpu.memory_space<vmem>>, vector<2x32x8xf32>
      %36 = vector.broadcast %34 : vector<2x32x1xf32> to vector<2x32x8xf32>
      %37 = arith.mulf %35, %36 : vector<2x32x8xf32>
      %c0_36 = arith.constant 0 : index
      %c0_37 = arith.constant 0 : index
      %c0_38 = arith.constant 0 : index
      %38 = vector.load %arg5[%c0_36, %c0_37, %c0_38] : memref<2x32x8xf32, #tpu.memory_space<vmem>>, vector<2x32x8xf32>
      tpu.vector_store %arg5[%c0_36, %c0_37, %c0_38], %37 {strides = array<i32>} : memref<2x32x8xf32, #tpu.memory_space<vmem>>, vector<2x32x8xf32>,
    } else {
    }
    return
  }
  func.func @transform_0(%arg0: i32, %arg1: i32, %arg2: i32) -> (i32, i32, i32) {
    %c0_i32 = arith.constant 0 : i32
    %c0_i32_0 = arith.constant 0 : i32
    return %arg0, %arg1, %c0_i32 : i32, i32, i32
  }
  func.func @transform_1(%arg0: i32, %arg1: i32, %arg2: i32) -> (i32, i32, i32) {
    %c0_i32 = arith.constant 0 : i32
    %c0_i32_0 = arith.constant 0 : i32
    return %arg0, %arg2, %c0_i32 : i32, i32, i32
  }
  func.func @transform_2(%arg0: i32, %arg1: i32, %arg2: i32) -> (i32, i32, i32) {
    %c0_i32 = arith.constant 0 : i32
    %c0_i32_0 = arith.constant 0 : i32
    return %arg0, %arg1, %c0_i32 : i32, i32, i32
  }
}

</mosaic_0001>

<bundles_post_ra>
// kernel: tpu_custom_call.1
= control target key start
LH: loop header
LB: loop body
LE: loop exit
PB: predicated region body
PF: predicated region fallthrough
CT: control target
= control target key end

     0   :  { %vm32_vm0 = vcmask 64512   ;;  %vm15_vm1 = vcmask 7168   ;;  %v952_v20 = vmov -inf   ;;  %vm276_vm2 = vcmask 130048   ;;  %s1254_s1 = inlined_call_operand.vmem [shape: f32[2,16,8], index: 1, kind: input, shape index: {}]   ;;  %s1255_s0 = inlined_call_operand.vmem [shape: f32[2,32,8], index: 0, kind: input, shape index: {}]   ;;  %s1256_s2 = inlined_call_operand.vmem [shape: f32[2,32,8], index: 2, kind: output, shape index: {}]  }
   0x1   :  { %v50_v0 = vld [vmem:[%s1254_s1 + $0x8] sm:$0xff]  ;;  %v52_v1 = vld [vmem:[%s1254_s1 + $0x18] sm:$0xff]  ;;  %v49_v2 = vld [vmem:[%s1254_s1] sm:$0xff]  ;;  %17 = vst.msk [vmem:[#allocation2 + $0x8] sm:$0xff] %vm15_vm1, %v952_v20  ;;  %v953_v36 = vmov 0   ;;  %v954_v38 = vmov 0.0  }
   0x2   :  { %859 = vmatprep.subr.msk.mxu0 %vm32_vm0, %v50_v0  ;;  %869 = vmatprep.subr.msk.mxu1 %vm32_vm0, %v52_v1  ;;  %v51_v3 = vld [vmem:[%s1254_s1 + $0x10] sm:$0xff]  ;;  %v41_v4 = vld [vmem:[%s1255_s0] sm:$0xff]  ;;  %v42_v6 = vld [vmem:[%s1255_s0 + $0x8] sm:$0xff]  ;;  %16 = vst.msk [vmem:[#allocation2] sm:$0xff] %vm15_vm1, %v952_v20 }
   0x3   :  { %860 = vmatpush3.xpose.msk.msra.mxu0 %vm32_vm0, %v50_v0  ;;  %870 = vmatpush3.xpose.msk.msra.mxu1 %vm32_vm0, %v52_v1  ;;  %v53_v5 = vmul.f32 2.828427, %v41_v4  ;;  %v45_v7 = vld [vmem:[%s1255_s0 + $0x20] sm:$0xff]  ;;  %v46_v8 = vld [vmem:[%s1255_s0 + $0x28] sm:$0xff]  ;;  %v43_v10 = vld [vmem:[%s1255_s0 + $0x10] sm:$0xff]  ;;  %18 = vst.msk [vmem:[#allocation2 + $0x10] sm:$0xff] %vm15_vm1, %v952_v20 }
   0x4   :  { %861 = vmatprep.subr.msk.mxu0 %vm32_vm0, %v49_v2  ;;  %871 = vmatprep.subr.msk.mxu1 %vm32_vm0, %v51_v3  ;;  %v57_v9 = vmul.f32 2.828427, %v45_v7  ;;  %v47_v11 = vld [vmem:[%s1255_s0 + $0x30] sm:$0xff]  ;;  %v54_v12 = vmul.f32 2.828427, %v42_v6  ;;  %v44_v15 = vld [vmem:[%s1255_s0 + $0x18] sm:$0xff] }
   0x5   :  { %863 = vmatprep.mubr.msk.f32.mxu0 %vm32_vm0, %v53_v5  ;;  %v58_v13 = vmul.f32 2.828427, %v46_v8  ;;  %v55_v14 = vmul.f32 2.828427, %v43_v10  ;;  %v59_v16 = vmul.f32 2.828427, %v47_v11  ;;  %903 = vset.pattern.permute.xlu1 %v953_v36 }
   0x6   :  { %873 = vmatprep.mubr.msk.f32.mxu1 %vm32_vm0, %v57_v9  ;;  %v48_v17 = vld [vmem:[%s1255_s0 + $0x38] sm:$0xff]  ;;  %v56_v18 = vmul.f32 2.828427, %v44_v15  ;;  %19 = vst.msk [vmem:[#allocation2 + $0x18] sm:$0xff] %vm15_vm1, %v952_v20  ;;  %20 = vst.msk [vmem:[#allocation2 + $0x20] sm:$0xff] %vm15_vm1, %v952_v20  ;;  %902 = vset.pattern.permute.xlu0 %v953_v36 }
   0x7   :  { %862 = vmatpush3.xpose.msk.msra.mxu0 %vm32_vm0, %v49_v2  ;;  %872 = vmatpush3.xpose.msk.msra.mxu1 %vm32_vm0, %v51_v3  ;;  %v60_v19 = vmul.f32 2.828427, %v48_v17  ;;  %21 = vst.msk [vmem:[#allocation2 + $0x28] sm:$0xff] %vm15_vm1, %v952_v20  ;;  %22 = vst.msk [vmem:[#allocation2 + $0x30] sm:$0xff] %vm15_vm1, %v952_v20 }
   0x8   :  { %879 = vmatprep.subr.mxu0 %v50_v0  ;;  %889 = vmatprep.subr.mxu1 %v52_v1  ;;  %23 = vst.msk [vmem:[#allocation2 + $0x38] sm:$0xff] %vm15_vm1, %v952_v20  ;;  %25 = vst.msk [vmem:[#allocation3 + $0x8] sm:$0xff] %vm15_vm1, %v954_v38  ;;  %v1078_v39 = vld [vmem:[#allocation2 + $0x8] sm:$0xff] }
   0x9   :  { %24 = vst.msk [vmem:[#allocation3] sm:$0xff] %vm15_vm1, %v954_v38  ;;  %26 = vst.msk [vmem:[#allocation3 + $0x10] sm:$0xff] %vm15_vm1, %v954_v38  ;;  %v1080_v41 = vld [vmem:[#allocation2] sm:$0xff] }
   0xa   :  { %864 = vmatmul.mubr.msk.f32.vlgmr.msra.gmra.mxu0 %vm32_vm0, %v54_v12  ;;  %874 = vmatmul.mubr.msk.f32.vlgmr.msra.gmra.mxu1 %vm32_vm0, %v58_v13  ;;  %27 = vst.msk [vmem:[#allocation3 + $0x18] sm:$0xff] %vm15_vm1, %v954_v38  ;;  %28 = vst.msk [vmem:[#allocation3 + $0x20] sm:$0xff] %vm15_vm1, %v954_v38  ;;  %v1115_v55 = vld [vmem:[#allocation2 + $0x10] sm:$0xff] }
   0xb   :  { %866 = vmatprep.mubr.msk.f32.mxu0 %vm32_vm0, %v55_v14  ;;  %876 = vmatprep.mubr.msk.f32.mxu1 %vm32_vm0, %v59_v16  ;;  %29 = vst.msk [vmem:[#allocation3 + $0x28] sm:$0xff] %vm15_vm1, %v954_v38  ;;  %30 = vst.msk [vmem:[#allocation3 + $0x30] sm:$0xff] %vm15_vm1, %v954_v38 }
   0xc   :  { %880 = vmatpush3.msra.mxu0 %v50_v0  ;;  %890 = vmatpush3.msra.mxu1 %v52_v1  ;;  %31 = vst.msk [vmem:[#allocation3 + $0x38] sm:$0xff] %vm15_vm1, %v954_v38 }
   0xd   :  { %881 = vmatprep.subr.mxu0 %v49_v2  ;;  %891 = vmatprep.subr.mxu1 %v51_v3  ;;  %33 = vst.msk [vmem:[#allocation4] sm:$0xff] %vm32_vm0, %v954_v38  ;;  %34 = vst.msk [vmem:[#allocation4 + $0x8] sm:$0xff] %vm32_vm0, %v954_v38  ;;  %v1095_v48 = vld [vmem:[#allocation2 + $0x20] sm:$0xff]  ;;  %v1134_v63 = vld [vmem:[#allocation2 + $0x18] sm:$0xff] }
   0xe   :  { %867 = vmatmul.mubr.msk.f32.gmra.mxu0 %vm32_vm0, %v56_v18  ;;  %877 = vmatmul.mubr.msk.f32.gmra.mxu1 %vm32_vm0, %v60_v19  ;;  %35 = vst.msk [vmem:[#allocation4 + $0x10] sm:$0xff] %vm32_vm0, %v954_v38  ;;  %36 = vst.msk [vmem:[#allocation4 + $0x18] sm:$0xff] %vm32_vm0, %v954_v38  ;;  %v1085_v44 = vld [vmem:[#allocation2 + $0x28] sm:$0xff]  ;;  %v1105_v52 = vld [vmem:[#allocation2 + $0x30] sm:$0xff] }
   0xf   :  { %882 = vmatpush3.msra.mxu0 %v49_v2  ;;  %892 = vmatpush3.msra.mxu1 %v51_v3  ;;  %37 = vst.msk [vmem:[#allocation4 + $0x20] sm:$0xff] %vm32_vm0, %v954_v38  ;;  %38 = vst.msk [vmem:[#allocation4 + $0x28] sm:$0xff] %vm32_vm0, %v954_v38  ;;  %v1124_v60 = vld [vmem:[#allocation2 + $0x38] sm:$0xff] }
  0x10   :  { %39 = vst.msk [vmem:[#allocation4 + $0x30] sm:$0xff] %vm32_vm0, %v954_v38  ;;  %40 = vst.msk [vmem:[#allocation4 + $0x38] sm:$0xff] %vm32_vm0, %v954_v38 }
  0xca   :  { %v1030_v21 = vpop.f32.mrf.mxu0  ;;  %v1032_v22 = vpop.f32.mrf.mxu1 }
  0xcb   :  { %v280_v23 = vsel %vm276_vm2, %v1030_v21, -inf  ;;  %v292_v27 = vsel %vm276_vm2, %v1032_v22, -inf }
  0xcc   :  { %281 = vmax.xlane.f32.xlu1 %v280_v23  ;;  %v1036_v24 = vpop.f32.mrf.mxu0  ;;  %v1038_v25 = vpop.f32.mrf.mxu1 }
  0xcd   :  { %v277_v26 = vsel %vm276_vm2, %v1036_v24, -inf  ;;  %v289_v31 = vsel %vm276_vm2, %v1038_v25, -inf }
  0xce   :  { %278 = vmax.xlane.f32.xlu0 %v277_v26  ;;  %v1044_v28 = vpop.f32.mrf.mxu0  ;;  %v1046_v29 = vpop.f32.mrf.mxu1 }
  0xcf   :  { %v298_v35 = vsel %vm276_vm2, %v1046_v29, -inf  ;;  %v286_v37 = vsel %vm276_vm2, %v1044_v28, -inf }
  0xd0   :  { %293 = vmax.xlane.f32.xlu1 %v292_v27  ;;  %v1048_v30 = vpop.f32.mrf.mxu1  ;;  %v1054_v33 = vpop.f32.mrf.mxu0 }
  0xd1   :  { %v295_v32 = vsel %vm276_vm2, %v1048_v30, -inf  ;;  %v283_v34 = vsel %vm276_vm2, %v1054_v33, -inf }
  0xd2   :  { %290 = vmax.xlane.f32.xlu0 %v289_v31 }
  0xd4   :  { %296 = vmax.xlane.f32.xlu1 %v295_v32 }
  0xd6   :  { %284 = vmax.xlane.f32.xlu0 %v283_v34 }
  0xd8   :  { %299 = vmax.xlane.f32.xlu1 %v298_v35 }
  0xda   :  { %287 = vmax.xlane.f32.xlu0 %v286_v37 }
 0x155   :  { %v282_v40 = vpop.xlane.xlu1 %281 }
 0x156   :  { %v1083_v42 = vmax.f32 %v1078_v39, %v282_v40 }
 0x157   :  { %v279_v43 = vpop.xlane.xlu0 %278 }
 0x158   :  { %v310_v45 = vsub.f32 %v1078_v39, %v1083_v42  ;;  %721 = vst.msk [vmem:[#allocation2 + $0x8] sm:$0xff] %vm15_vm1, %v1083_v42  ;;  %v1092_v46 = vmax.f32 %v1080_v41, %v279_v43  ;;  %340 = vperm.xlu1 %903, %v1083_v42  }
 0x159   :  { %v294_v47 = vpop.xlane.xlu1 %293 }
 0x15a   :  { %v309_v49 = vsub.f32 %v1080_v41, %v1092_v46  ;;  %720 = vst.msk [vmem:[#allocation2] sm:$0xff] %vm15_vm1, %v1092_v46  ;;  %v1102_v50 = vmax.f32 %v1085_v44, %v294_v47  ;;  %335 = vperm.xlu0 %902, %v1092_v46  }
 0x15b   :  { %v291_v51 = vpop.xlane.xlu0 %290 }
 0x15c   :  { %v314_v53 = vsub.f32 %v1085_v44, %v1102_v50  ;;  %725 = vst.msk [vmem:[#allocation2 + $0x28] sm:$0xff] %vm15_vm1, %v1102_v50  ;;  %v1112_v54 = vmax.f32 %v1095_v48, %v291_v51  ;;  %360 = vperm.xlu1 %903, %v1102_v50  }
 0x15d   :  { %v297_v56 = vpop.xlane.xlu1 %296 }
 0x15e   :  { %v313_v57 = vsub.f32 %v1095_v48, %v1112_v54  ;;  %724 = vst.msk [vmem:[#allocation2 + $0x20] sm:$0xff] %vm15_vm1, %v1112_v54  ;;  %v1122_v58 = vmax.f32 %v1105_v52, %v297_v56  ;;  %v327_v41 = vmul.f32 1.442695, %v314_v53 }
 0x15f   :  { %v285_v59 = vpop.xlane.xlu0 %284 }
 0x160   :  { %v1127_v61 = vmax.f32 %v1115_v55, %v285_v59  ;;  %355 = vperm.xlu1 %903, %v1112_v54   ;;  %v315_v62 = vsub.f32 %v1105_v52, %v1122_v58  ;;  %726 = vst.msk [vmem:[#allocation2 + $0x30] sm:$0xff] %vm15_vm1, %v1122_v58  ;;  %v325_v42 = vmul.f32 1.442695, %v313_v57  ;;  %v398_v57 = vld [vmem:[#allocation3 + $0x8] sm:$0xff] }
 0x161   :  { %v300_v0 = vpop.xlane.xlu1 %299 }
 0x162   :  { %v311_v1 = vsub.f32 %v1115_v55, %v1127_v61  ;;  %722 = vst.msk [vmem:[#allocation2 + $0x10] sm:$0xff] %vm15_vm1, %v1127_v61  ;;  %v1141_v2 = vmax.f32 %v1124_v60, %v300_v0 }
 0x163   :  { %v288_v3 = vpop.xlane.xlu0 %287 }
 0x164   :  { %v1144_v4 = vmax.f32 %v1134_v63, %v288_v3  ;;  %v316_v5 = vsub.f32 %v1124_v60, %v1141_v2  ;;  %727 = vst.msk [vmem:[#allocation2 + $0x38] sm:$0xff] %vm15_vm1, %v1141_v2  ;;  %v319_v3 = vmul.f32 1.442695, %v310_v45  ;;  %v329_v45 = vmul.f32 1.442695, %v315_v62 }
 0x166   :  { %v312_v6 = vsub.f32 %v1134_v63, %v1144_v4  ;;  %723 = vst.msk [vmem:[#allocation2 + $0x18] sm:$0xff] %vm15_vm1, %v1144_v4  ;;  %350 = vperm.xlu1 %903, %v1144_v4   ;;  %v331_v46 = vmul.f32 1.442695, %v316_v5  ;;  %v397_v5 = vld [vmem:[#allocation3] sm:$0xff] }
 0x168   :  { %v323_v39 = vmul.f32 1.442695, %v312_v6 }
 0x16a   :  { %345 = vperm.xlu1 %903, %v1127_v61   ;;  %v402_v61 = vld [vmem:[#allocation3 + $0x28] sm:$0xff] }
 0x16e   :  { %365 = vperm.xlu1 %903, %v1122_v58  }
 0x172   :  { %370 = vperm.xlu1 %903, %v1141_v2   ;;  %v401_v2 = vld [vmem:[#allocation3 + $0x20] sm:$0xff] }
 0x1d3   :  { %v341_v7 = vpop.permute.xlu1 %340 }
 0x1d4   :  { %v374_v8 = vsub.f32 %v1030_v21, %v341_v7 }
 0x1d5   :  { %v336_v9 = vpop.permute.xlu0 %335 }
 0x1d6   :  { %v383_v10 = vmul.f32 1.442695, %v374_v8  ;;  %v373_v11 = vsub.f32 %v1036_v24, %v336_v9  ;;  %v317_v8 = vmul.f32 1.442695, %v309_v49  ;;  %v321_v9 = vmul.f32 1.442695, %v311_v1 }
 0x1d7   :  { %v361_v12 = vpop.permute.xlu1 %360 }
 0x1d8   :  { %904 = vpow2.f32 %v383_v10  ;;  %v381_v13 = vmul.f32 1.442695, %v373_v11  ;;  %v378_v14 = vsub.f32 %v1032_v22, %v361_v12 }
 0x1da   :  { %906 = vpow2.f32 %v381_v13  ;;  %v391_v15 = vmul.f32 1.442695, %v378_v14 }
 0x1db   :  { %v356_v16 = vpop.permute.xlu1 %355 }
 0x1dc   :  { %908 = vpow2.f32 %v391_v15  ;;  %v377_v17 = vsub.f32 %v1038_v25, %v356_v16  ;;  %v400_v15 = vld [vmem:[#allocation3 + $0x18] sm:$0xff] }
 0x1de   :  { %v389_v18 = vmul.f32 1.442695, %v377_v17 }
 0x1e0   :  { %910 = vpow2.f32 %v389_v18 }
 0x1e1   :  { %v351_v19 = vpop.permute.xlu1 %350 }
 0x1e2   :  { %v376_v20 = vsub.f32 %v1044_v28, %v351_v19  ;;  %v399_v19 = vld [vmem:[#allocation3 + $0x10] sm:$0xff] }
 0x1e4   :  { %v387_v21 = vmul.f32 1.442695, %v376_v20 }
 0x1e5   :  { %v905_v23 = vpop.eup %904  ;;  %v346_v26 = vpop.permute.xlu1 %345 }
 0x1e6   :  { %912 = vpow2.f32 %v387_v21  ;;  %v375_v24 = vsub.f32 %v1054_v33, %v346_v26  ;;  %v416_v27 = vsel %vm276_vm2, %v905_v23, 0.0 }
 0x1e7   :  { %v907_v22 = vpop.eup %906  ;;  %417 = vadd.xlane.f32.xlu0 %v416_v27 }
 0x1e8   :  { %v385_v31 = vmul.f32 1.442695, %v375_v24  ;;  %883 = vmatprep.mubr.msk.f32.mxu0 %vm276_vm2, %v907_v22  ;;  %v413_v40 = vsel %vm276_vm2, %v907_v22, 0.0  ;;  %v403_v24 = vld [vmem:[#allocation3 + $0x30] sm:$0xff] }
 0x1e9   :  { %v909_v32 = vpop.eup %908  ;;  %v366_v25 = vpop.permute.xlu1 %365  ;;  %884 = vmatmul.mubr.msk.f32.vlgmr.msra.gmra.mxu0 %vm276_vm2, %v905_v23 }
 0x1ea   :  { %914 = vpow2.f32 %v385_v31  ;;  %v379_v28 = vsub.f32 %v1048_v30, %v366_v25  ;;  %v428_v34 = vsel %vm276_vm2, %v909_v32, 0.0 }
 0x1eb   :  { %429 = vadd.xlane.f32.xlu1 %v428_v34 }
 0x1ec   :  { %v393_v35 = vmul.f32 1.442695, %v379_v28  ;;  %v404_v28 = vld [vmem:[#allocation3 + $0x38] sm:$0xff] }
 0x1ed   :  { %v911_v36 = vpop.eup %910  ;;  %v371_v33 = vpop.permute.xlu1 %370 }
 0x1ee   :  { %916 = vpow2.f32 %v393_v35  ;;  %v380_v37 = vsub.f32 %v1046_v29, %v371_v33  ;;  %893 = vmatprep.mubr.msk.f32.mxu1 %vm276_vm2, %v911_v36  ;;  %v425_v38 = vsel %vm276_vm2, %v911_v36, 0.0 }
 0x1ef   :  { %894 = vmatmul.mubr.msk.f32.vlgmr.msra.gmra.mxu1 %vm276_vm2, %v909_v32  ;;  %426 = vadd.xlane.f32.xlu0 %v425_v38 }
 0x1f0   :  { %v395_v43 = vmul.f32 1.442695, %v380_v37  ;;  %414 = vadd.xlane.f32.xlu1 %v413_v40 }
 0x1f2   :  { %918 = vpow2.f32 %v395_v43 }
 0x1f3   :  { %v913_v30 = vpop.eup %912  ;;  %920 = vpow2.f32 %v319_v3 }
 0x1f4   :  { %v422_v47 = vsel %vm276_vm2, %v913_v30, 0.0  ;;  %922 = vpow2.f32 %v317_v8 }
 0x1f5   :  { %423 = vadd.xlane.f32.xlu1 %v422_v47  ;;  %924 = vpow2.f32 %v321_v9  ;;  %v649_v9 = vld [vmem:[#allocation4 + $0x8] sm:$0xff] }
 0x1f6   :  { %926 = vpow2.f32 %v323_v39 }
 0x1f7   :  { %v915_v51 = vpop.eup %914  ;;  %928 = vpow2.f32 %v325_v42  ;;  %v648_v42 = vld [vmem:[#allocation4] sm:$0xff] }
 0x1f8   :  { %886 = vmatprep.mubr.msk.f32.mxu0 %vm276_vm2, %v915_v51  ;;  %v419_v29 = vsel %vm276_vm2, %v915_v51, 0.0  ;;  %930 = vpow2.f32 %v327_v41 }
 0x1f9   :  { %420 = vadd.xlane.f32.xlu0 %v419_v29  ;;  %887 = vmatmul.mubr.msk.f32.gmra.mxu0 %vm276_vm2, %v913_v30  ;;  %932 = vpow2.f32 %v329_v45 }
 0x1fa   :  { %934 = vpow2.f32 %v331_v46 }
 0x1fb   :  { %v917_v56 = vpop.eup %916 }
 0x1fc   :  { %896 = vmatprep.mubr.msk.f32.mxu1 %vm276_vm2, %v917_v56  ;;  %v431_v59 = vsel %vm276_vm2, %v917_v56, 0.0 }
 0x1fd   :  { %432 = vadd.xlane.f32.xlu0 %v431_v59 }
 0x1ff   :  { %v919_v0 = vpop.eup %918 }
 0x200   :  { %897 = vmatmul.mubr.msk.f32.gmra.mxu1 %vm276_vm2, %v919_v0  ;;  %v434_v7 = vsel %vm276_vm2, %v919_v0, 0.0  ;;  %v921_v49 = vpop.eup %920 }
 0x201   :  { %435 = vadd.xlane.f32.xlu1 %v434_v7  ;;  %v923_v48 = vpop.eup %922  ;;  %v406_v58 = vmul.f32 %v921_v49, %v398_v57 }
 0x202   :  { %v925_v54 = vpop.eup %924  ;;  %v405_v10 = vmul.f32 %v923_v48, %v397_v5 }
 0x203   :  { %v927_v44 = vpop.eup %926  ;;  %v407_v23 = vmul.f32 %v925_v54, %v399_v19 }
 0x204   :  { %v929_v50 = vpop.eup %928  ;;  %v408_v17 = vmul.f32 %v927_v44, %v400_v15  ;;  %v654_v15 = vld [vmem:[#allocation4 + $0x30] sm:$0xff] }
 0x205   :  { %v931_v53 = vpop.eup %930  ;;  %v409_v6 = vmul.f32 %v929_v50, %v401_v2  ;;  %v650_v2 = vld [vmem:[#allocation4 + $0x10] sm:$0xff] }
 0x206   :  { %v933_v52 = vpop.eup %932  ;;  %v410_v63 = vmul.f32 %v931_v53, %v402_v61 }
 0x207   :  { %v935_v55 = vpop.eup %934  ;;  %v411_v31 = vmul.f32 %v933_v52, %v403_v24 }
 0x208   :  { %v412_v33 = vmul.f32 %v935_v55, %v404_v28 }
 0x212   :  { %663 = vperm.xlu1 %903, %v921_v49  }
 0x213   :  { %658 = vperm.xlu0 %902, %v923_v48  }
 0x216   :  { %668 = vperm.xlu1 %903, %v925_v54   ;;  %v653_v54 = vld [vmem:[#allocation4 + $0x28] sm:$0xff] }
 0x217   :  { %673 = vperm.xlu0 %902, %v927_v44  }
 0x21a   :  { %678 = vperm.xlu1 %903, %v929_v50  }
 0x21b   :  { %683 = vperm.xlu0 %902, %v931_v53  }
 0x21e   :  { %688 = vperm.xlu1 %903, %v933_v52   ;;  %v652_v52 = vld [vmem:[#allocation4 + $0x20] sm:$0xff] }
 0x21f   :  { %693 = vperm.xlu0 %902, %v935_v55  }
 0x270   :  { %v418_v60 = vpop.xlane.xlu0 %417 }
 0x271   :  { %v438_v62 = vadd.f32 %v418_v60, %v406_v58 }
 0x273   :  { %447 = vst.msk [vmem:[#allocation3 + $0x8] sm:$0xff] %vm15_vm1, %v438_v62 }
 0x274   :  { %v430_v1 = vpop.xlane.xlu1 %429 }
 0x275   :  { %v442_v4 = vadd.f32 %v430_v1, %v410_v63  ;;  %v651_v1 = vld [vmem:[#allocation4 + $0x18] sm:$0xff] }
 0x277   :  { %451 = vst.msk [vmem:[#allocation3 + $0x28] sm:$0xff] %vm15_vm1, %v442_v4 }
 0x278   :  { %v427_v11 = vpop.xlane.xlu0 %426 }
 0x279   :  { %v415_v12 = vpop.xlane.xlu1 %414  ;;  %v441_v13 = vadd.f32 %v427_v11, %v409_v6 }
 0x27a   :  { %v437_v14 = vadd.f32 %v415_v12, %v405_v10  ;;  %v732_v16 = vld [vmem:[#allocation3 + $0x8] sm:$0xff]  ;;  %v655_v12 = vld [vmem:[#allocation4 + $0x38] sm:$0xff] }
 0x27b   :  { %450 = vst.msk [vmem:[#allocation3 + $0x20] sm:$0xff] %vm15_vm1, %v441_v13  ;;  %936 = vrcp.f32 %v732_v16 }
 0x27c   :  { %446 = vst.msk [vmem:[#allocation3] sm:$0xff] %vm15_vm1, %v437_v14 }
 0x27e   :  { %v424_v18 = vpop.xlane.xlu1 %423  ;;  %v736_v20 = vld [vmem:[#allocation3 + $0x28] sm:$0xff] }
 0x27f   :  { %v440_v21 = vadd.f32 %v424_v18, %v408_v17  ;;  %938 = vrcp.f32 %v736_v20 }
 0x281   :  { %449 = vst.msk [vmem:[#allocation3 + $0x18] sm:$0xff] %vm15_vm1, %v440_v21 }
 0x282   :  { %v421_v26 = vpop.xlane.xlu0 %420  ;;  %v735_v32 = vld [vmem:[#allocation3 + $0x20] sm:$0xff] }
 0x283   :  { %v439_v27 = vadd.f32 %v421_v26, %v407_v23  ;;  %v731_v22 = vld [vmem:[#allocation3] sm:$0xff] }
 0x284   :  { %940 = vrcp.f32 %v731_v22 }
 0x285   :  { %448 = vst.msk [vmem:[#allocation3 + $0x10] sm:$0xff] %vm15_vm1, %v439_v27  ;;  %942 = vrcp.f32 %v735_v32 }
 0x286   :  { %v433_v25 = vpop.xlane.xlu0 %432 }
 0x287   :  { %v443_v34 = vadd.f32 %v433_v25, %v411_v31 }
 0x288   :  { %v937_v35 = vpop.eup %936  ;;  %v734_v36 = vld [vmem:[#allocation3 + $0x18] sm:$0xff] }
 0x289   :  { %452 = vst.msk [vmem:[#allocation3 + $0x30] sm:$0xff] %vm15_vm1, %v443_v34  ;;  %762 = vperm.xlu0 %902, %v937_v35   ;;  %944 = vrcp.f32 %v734_v36 }
 0x28a   :  { %v436_v37 = vpop.xlane.xlu1 %435 }
 0x28b   :  { %v444_v38 = vadd.f32 %v436_v37, %v412_v33 }
 0x28c   :  { %v939_v40 = vpop.eup %938  ;;  %v733_v43 = vld [vmem:[#allocation3 + $0x10] sm:$0xff] }
 0x28d   :  { %453 = vst.msk [vmem:[#allocation3 + $0x38] sm:$0xff] %vm15_vm1, %v444_v38  ;;  %782 = vperm.xlu0 %902, %v939_v40   ;;  %946 = vrcp.f32 %v733_v43 }
 0x28e   :  { %v659_v3 = vpop.permute.xlu0 %658  ;;  %v664_v7 = vpop.permute.xlu1 %663 }
 0x28f   :  { %v697_v45 = vmul.f32 %v664_v7, %v649_v9  ;;  %v696_v49 = vmul.f32 %v659_v3, %v648_v42 }
 0x290   :  { %v737_v30 = vld [vmem:[#allocation3 + $0x30] sm:$0xff] }
 0x291   :  { %v941_v47 = vpop.eup %940  ;;  %948 = vrcp.f32 %v737_v30 }
 0x292   :  { %757 = vperm.xlu1 %903, %v941_v47   ;;  %v943_v29 = vpop.eup %942  ;;  %v674_v39 = vpop.permute.xlu0 %673 }
 0x293   :  { %v669_v41 = vpop.permute.xlu1 %668  ;;  %v699_v4 = vmul.f32 %v674_v39, %v651_v1 }
 0x294   :  { %v738_v51 = vld [vmem:[#allocation3 + $0x38] sm:$0xff]  ;;  %v698_v6 = vmul.f32 %v669_v41, %v650_v2 }
 0x295   :  { %950 = vrcp.f32 %v738_v51 }
 0x296   :  { %v945_v56 = vpop.eup %944  ;;  %777 = vperm.xlu1 %903, %v943_v29   ;;  %v684_v44 = vpop.permute.xlu0 %683 }
 0x297   :  { %772 = vperm.xlu0 %902, %v945_v56   ;;  %v679_v55 = vpop.permute.xlu1 %678  ;;  %v701_v57 = vmul.f32 %v684_v44, %v653_v54 }
 0x298   :  { %v700_v60 = vmul.f32 %v679_v55, %v652_v52 }
 0x29a   :  { %v947_v59 = vpop.eup %946  ;;  %v694_v13 = vpop.permute.xlu0 %693 }
 0x29b   :  { %767 = vperm.xlu1 %903, %v947_v59   ;;  %v689_v16 = vpop.permute.xlu1 %688  ;;  %v703_v17 = vmul.f32 %v694_v13, %v655_v12 }
 0x29c   :  { %v702_v19 = vmul.f32 %v689_v16, %v654_v15 }
 0x29e   :  { %v949_v0 = vpop.eup %948 }
 0x29f   :  { %787 = vperm.xlu1 %903, %v949_v0  }
 0x2a2   :  { %v951_v8 = vpop.eup %950 }
 0x2a3   :  { %792 = vperm.xlu0 %902, %v951_v8  }
 0x2a9   :  { %v885_v46 = vpop.f32.mrf.mxu0 }
 0x2aa   :  { %v705_v48 = vadd.f32 %v885_v46, %v697_v45 }
 0x2ab   :  { %v532_v50 = vpop.f32.mrf.mxu0 }
 0x2ac   :  { %713 = vst.msk [vmem:[#allocation4 + $0x8] sm:$0xff] %vm32_vm0, %v705_v48  ;;  %v704_v53 = vadd.f32 %v696_v49, %v532_v50 }
 0x2ae   :  { %712 = vst.msk [vmem:[#allocation4] sm:$0xff] %vm32_vm0, %v704_v53 }
 0x2af   :  { %v895_v58 = vpop.f32.mrf.mxu1 }
 0x2b0   :  { %v709_v61 = vadd.f32 %v895_v58, %v701_v57 }
 0x2b1   :  { %v629_v62 = vpop.f32.mrf.mxu1 }
 0x2b2   :  { %717 = vst.msk [vmem:[#allocation4 + $0x28] sm:$0xff] %vm32_vm0, %v709_v61  ;;  %v708_v63 = vadd.f32 %v700_v60, %v629_v62 }
 0x2b3   :  { %v748_v26 = vld [vmem:[#allocation4 + $0x8] sm:$0xff] }
 0x2b4   :  { %716 = vst.msk [vmem:[#allocation4 + $0x20] sm:$0xff] %vm32_vm0, %v708_v63 }
 0x2b5   :  { %v747_v28 = vld [vmem:[#allocation4] sm:$0xff] }
 0x2b9   :  { %v888_v5 = vpop.f32.mrf.mxu0  ;;  %v752_v22 = vld [vmem:[#allocation4 + $0x28] sm:$0xff] }
 0x2ba   :  { %v707_v10 = vadd.f32 %v888_v5, %v699_v4 }
 0x2bb   :  { %v542_v11 = vpop.f32.mrf.mxu0  ;;  %v751_v35 = vld [vmem:[#allocation4 + $0x20] sm:$0xff] }
 0x2bc   :  { %715 = vst.msk [vmem:[#allocation4 + $0x18] sm:$0xff] %vm32_vm0, %v707_v10  ;;  %v706_v14 = vadd.f32 %v698_v6, %v542_v11 }
 0x2be   :  { %714 = vst.msk [vmem:[#allocation4 + $0x10] sm:$0xff] %vm32_vm0, %v706_v14 }
 0x2c0   :  { %v898_v18 = vpop.f32.mrf.mxu1 }
 0x2c1   :  { %v711_v20 = vadd.f32 %v898_v18, %v703_v17 }
 0x2c2   :  { %v639_v21 = vpop.f32.mrf.mxu1 }
 0x2c3   :  { %719 = vst.msk [vmem:[#allocation4 + $0x38] sm:$0xff] %vm32_vm0, %v711_v20  ;;  %v710_v23 = vadd.f32 %v702_v19, %v639_v21  ;;  %v750_v37 = vld [vmem:[#allocation4 + $0x18] sm:$0xff] }
 0x2c5   :  { %718 = vst.msk [vmem:[#allocation4 + $0x30] sm:$0xff] %vm32_vm0, %v710_v23  ;;  %v749_v43 = vld [vmem:[#allocation4 + $0x10] sm:$0xff] }
 0x2ca   :  { %v754_v59 = vld [vmem:[#allocation4 + $0x38] sm:$0xff] }
 0x2cc   :  { %v753_v51 = vld [vmem:[#allocation4 + $0x30] sm:$0xff] }
 0x304   :  { %v763_v24 = vpop.permute.xlu0 %762 }
 0x305   :  { %v796_v27 = vmul.f32 %v763_v24, %v748_v26 }
 0x307   :  { %804 = vst.msk [vmem:[%s1256_s2 + $0x8] sm:$0xff] %vm32_vm0, %v796_v27 }
 0x308   :  { %v783_v31 = vpop.permute.xlu0 %782 }
 0x309   :  { %v800_v32 = vmul.f32 %v783_v31, %v752_v22 }
 0x30b   :  { %808 = vst.msk [vmem:[%s1256_s2 + $0x28] sm:$0xff] %vm32_vm0, %v800_v32 }
 0x30d   :  { %v758_v25 = vpop.permute.xlu1 %757 }
 0x30e   :  { %v795_v34 = vmul.f32 %v758_v25, %v747_v28 }
 0x310   :  { %803 = vst.msk [vmem:[%s1256_s2] sm:$0xff] %vm32_vm0, %v795_v34 }
 0x311   :  { %v778_v36 = vpop.permute.xlu1 %777 }
 0x312   :  { %v799_v33 = vmul.f32 %v778_v36, %v751_v35  ;;  %v773_v38 = vpop.permute.xlu0 %772 }
 0x313   :  { %v798_v40 = vmul.f32 %v773_v38, %v750_v37 }
 0x314   :  { %807 = vst.msk [vmem:[%s1256_s2 + $0x20] sm:$0xff] %vm32_vm0, %v799_v33 }
 0x315   :  { %806 = vst.msk [vmem:[%s1256_s2 + $0x18] sm:$0xff] %vm32_vm0, %v798_v40 }
 0x316   :  { %v768_v30 = vpop.permute.xlu1 %767 }
 0x317   :  { %v797_v47 = vmul.f32 %v768_v30, %v749_v43 }
 0x319   :  { %805 = vst.msk [vmem:[%s1256_s2 + $0x10] sm:$0xff] %vm32_vm0, %v797_v47 }
 0x31a   :  { %v788_v29 = vpop.permute.xlu1 %787 }
 0x31b   :  { %v801_v56 = vmul.f32 %v788_v29, %v753_v51 }
 0x31d   :  { %809 = vst.msk [vmem:[%s1256_s2 + $0x30] sm:$0xff] %vm32_vm0, %v801_v56 }
 0x31e   :  { %v793_v0 = vpop.permute.xlu0 %792 }
 0x31f   :  { %v802_v3 = vmul.f32 %v793_v0, %v754_v59 }
 0x321   :  { %810 = vst.msk [vmem:[%s1256_s2 + $0x38] sm:$0xff] %vm32_vm0, %v802_v3 }

</bundles_post_ra>
